<compile_context>
chip_gen: v6e
topology: v6e:2x2x1
jax: 0.10.0
libtpu: 0.0.40
codegen_flags: <defaults>
</compile_context>

<pallas_src>
from functools import partial

import jax
import jax.numpy as jnp
from jax.experimental import pallas as pl
from jax.experimental.pallas import tpu as pltpu

EPS = 1e-5


# --------------------------- kernel helpers ---------------------------

def _affine_relu_conv(h, w_ref, bias, scale, shift, first_col, last_col):
    """relu(h*scale + shift) followed by Conv1d(C, C, kernel_size=3, padding=1).

    h            : (C, Lp) f32 value, C on sublanes, L on lanes
    w_ref        : (C_out, 3*C_in) fused weight  OR  (3, C_out, C_in) per-tap
    bias         : (C_out, 1) f32
    scale/shift  : (C, 1) f32 (BatchNorm folded to one affine)
    first_col/last_col : (C, Lp) bool masks for the two halo columns
    """
    C, Lp = h.shape
    h = jnp.maximum(h * scale + shift, 0.0)                       # folded BN + ReLU
    # Shifted conv windows via XLU roll + single-column zero mask (no pad scratch).
    left = jnp.where(first_col, 0.0, pltpu.roll(h, 1, 1))          # hpad[:, 0:Lp]
    right = jnp.where(last_col, 0.0, pltpu.roll(h, Lp - 1, 1))     # hpad[:, 2:Lp+2]
    dt = w_ref.dtype                                               # bf16 when C>=128
    if w_ref.ndim == 2:
        # Fused 3-tap matmul: (C, 3C) x (3C, Lp)
        stacked = jnp.concatenate([left, h, right], axis=0).astype(dt)
        y = jnp.dot(w_ref[...], stacked, preferred_element_type=jnp.float32) + bias
    else:
        y = jnp.dot(w_ref[1], h.astype(dt), preferred_element_type=jnp.float32) + bias
        y = y + jnp.dot(w_ref[0], left.astype(dt), preferred_element_type=jnp.float32)
        y = y + jnp.dot(w_ref[2], right.astype(dt), preferred_element_type=jnp.float32)
    return y


# --------------------------- kernels ---------------------------

def _pool_stats_kernel(xe_ref, xo_ref, sc_ref, stat_ref):
    """Shortcut MaxPool1d(k=3, s=2) over right-zero-padded x, plus BN1 partials.

    xe_ref, xo_ref : (B_t, C, Lp)  x[:, :, 0::2] / x[:, :, 1::2]
    sc_ref         : (B_t, C, Lp)  pooled shortcut
    stat_ref       : (1, C, 2)     [:, :, 0] = sum, [:, :, 1] = sum of squares
    """
    B_t, C, Lp = xe_ref.shape
    col = jax.lax.broadcasted_iota(jnp.int32, (C, Lp), 1)
    last_col = col == (Lp - 1)
    ssum = jnp.zeros((C, 1), jnp.float32)
    ssq = jnp.zeros((C, 1), jnp.float32)
    for b in range(B_t):
        xe = xe_ref[b].astype(jnp.float32)
        xo = xo_ref[b].astype(jnp.float32)
        # window l covers padded positions 2l, 2l+1, 2l+2 -> max(xe[l], xo[l], xe[l+1])
        # xe[l+1] via roll; last window's third element is the ConstantPad1d zero.
        nxt = jnp.where(last_col, 0.0, pltpu.roll(xe, Lp - 1, 1))
        sc = jnp.maximum(jnp.maximum(xe, xo), nxt)
        sc_ref[b] = sc.astype(sc_ref.dtype)
        ssum = ssum + jnp.sum(sc, axis=1, keepdims=True)
        ssq = ssq + jnp.sum(sc * sc, axis=1, keepdims=True)
    stat_ref[0, :, 0:1] = ssum
    stat_ref[0, :, 1:2] = ssq


def _bn_relu_conv_stats_kernel(h_ref, w_ref, p_ref, y_ref, stat_ref):
    """BN1(folded)+ReLU+Conv1 and BN2 partial stats. p_ref = [bias, scale, shift]."""
    B_t, C, Lp = h_ref.shape
    col = jax.lax.broadcasted_iota(jnp.int32, (C, Lp), 1)
    first_col = col == 0
    last_col = col == (Lp - 1)
    bias, scale, shift = p_ref[0], p_ref[1], p_ref[2]
    ssum = jnp.zeros((C, 1), jnp.float32)
    ssq = jnp.zeros((C, 1), jnp.float32)
    for b in range(B_t):
        h = h_ref[b].astype(jnp.float32)
        y = _affine_relu_conv(h, w_ref, bias, scale, shift, first_col, last_col)
        y_ref[b] = y.astype(y_ref.dtype)
        ssum = ssum + jnp.sum(y, axis=1, keepdims=True)
        ssq = ssq + jnp.sum(y * y, axis=1, keepdims=True)
    stat_ref[0, :, 0:1] = ssum
    stat_ref[0, :, 1:2] = ssq


def _bn_relu_conv_residual_kernel(h_ref, sc_ref, w_ref, p_ref, out_ref):
    """BN2(folded)+ReLU+Conv2 + residual add of the pooled shortcut."""
    B_t, C, Lp = h_ref.shape
    col = jax.lax.broadcasted_iota(jnp.int32, (C, Lp), 1)
    first_col = col == 0
    last_col = col == (Lp - 1)
    bias, scale, shift = p_ref[0], p_ref[1], p_ref[2]
    for b in range(B_t):
        h = h_ref[b].astype(jnp.float32)
        y = _affine_relu_conv(h, w_ref, bias, scale, shift, first_col, last_col)
        out_ref[b] = (y + sc_ref[b].astype(jnp.float32)).astype(out_ref.dtype)


# --------------------------- wrapper ---------------------------

def _vmem_limit_bytes():
    """v5e/v6e have 128 MiB physical VMEM; v7x only 64 MiB per TC."""
    try:
        kind = jax.devices()[0].device_kind.lower()
    except Exception:  # pragma: no cover
        return 48 * 1024 * 1024
    if "v5" in kind or "v6" in kind:
        return 96 * 1024 * 1024
    return 48 * 1024 * 1024


def _bn_fold(stats, count, gamma, beta):
    """Training-mode BatchNorm1d (biased variance) folded into y = x*scale + shift."""
    s = jnp.sum(stats, axis=0)                             # (C, 2)
    mean = s[:, 0:1] / count
    var = jnp.maximum(s[:, 1:2] / count - mean * mean, 0.0)  # clamp: E[x^2]-E[x]^2 >= 0
    scale = gamma * jax.lax.rsqrt(var + EPS)
    shift = beta - mean * scale
    return scale, shift


@partial(jax.jit, static_argnames=("intermediates_dtype",))
def resnet_block(x, w1, b1, g1, bt1, w2, b2, g2, bt2,
                 intermediates_dtype=jnp.float32):
    """x: (N, C, L) NCL layout; conv weights (3, C_in, C_out); 1-D params (C,).

    Set intermediates_dtype=jnp.bfloat16 on memory-bound configs to halve the
    HBM traffic of the sc / y1 intermediates (loosens accuracy to ~1e-2 rel).
    """
    N, C, L = x.shape
    assert L % 2 == 0, "kernel assumes an even input length"
    Lp = L // 2
    f32 = jnp.float32
    inter_dt = intermediates_dtype

    # stride-2 even/odd views feeding the maxpool (see TODO at top of file)
    xe = x[:, :, 0::2]                                     # x[2l]
    xo = x[:, :, 1::2]                                     # x[2l+1]

    # Batch tiling: several batch elements per grid step while blocks stay small.
    B_t = 1
    for cand in range(min(N, 8), 0, -1):
        if N % cand == 0 and cand * C * Lp * 4 <= (1 << 20):
            B_t = cand
            break
    G = N // B_t

    # Conv weight prep: per-tap transpose (3,Ci,Co)->(3,Co,Ci); fuse the three taps
    # into one (Co, 3Ci) matmul when the contraction would underfill the MXU.
    dot_dtype = jnp.bfloat16 if C >= 128 else f32          # bf16-native MXU when MXU-bound
    fuse = (C < 256) and (C % 8 == 0)
    wt1 = jnp.transpose(w1, (0, 2, 1)).astype(f32)
    wt2 = jnp.transpose(w2, (0, 2, 1)).astype(f32)
    if fuse:
        wk1 = jnp.concatenate([wt1[0], wt1[1], wt1[2]], axis=1).astype(dot_dtype)
        wk2 = jnp.concatenate([wt2[0], wt2[1], wt2[2]], axis=1).astype(dot_dtype)
    else:
        wk1 = wt1.astype(dot_dtype)
        wk2 = wt2.astype(dot_dtype)

    b1c = b1.reshape(C, 1).astype(f32)
    b2c = b2.reshape(C, 1).astype(f32)
    g1c, bt1c = g1.reshape(C, 1).astype(f32), bt1.reshape(C, 1).astype(f32)
    g2c, bt2c = g2.reshape(C, 1).astype(f32), bt2.reshape(C, 1).astype(f32)

    act = pl.BlockSpec((B_t, C, Lp), lambda g: (g, 0, 0))
    stat = pl.BlockSpec((1, C, 2), lambda g: (g, 0, 0))
    if wk1.ndim == 2:
        wspec = pl.BlockSpec(wk1.shape, lambda g: (0, 0))
    else:
        wspec = pl.BlockSpec(wk1.shape, lambda g: (0, 0, 0))
    pspec = pl.BlockSpec((3, C, 1), lambda g: (0, 0, 0))

    cparams = pltpu.CompilerParams(
        dimension_semantics=("parallel",),                 # shard batch over TCs
        vmem_limit_bytes=_vmem_limit_bytes())

    stat_shape = jax.ShapeDtypeStruct((G, C, 2), f32)

    # pass 1: shortcut maxpool + BN1 partial stats
    sc, stats1 = pl.pallas_call(
        _pool_stats_kernel,
        grid=(G,),
        in_specs=[act, act],
        out_specs=[act, stat],
        out_shape=[jax.ShapeDtypeStruct((N, C, Lp), inter_dt), stat_shape],
        compiler_params=cparams,
    )(xe, xo)
    scale1, shift1 = _bn_fold(stats1, N * Lp, g1c, bt1c)
    params1 = jnp.stack([b1c, scale1, shift1], axis=0)     # (3, C, 1)

    # pass 2: BN1(affine)+ReLU+Conv1 + BN2 partial stats
    y1, stats2 = pl.pallas_call(
        _bn_relu_conv_stats_kernel,
        grid=(G,),
        in_specs=[act, wspec, pspec],
        out_specs=[act, stat],
        out_shape=[jax.ShapeDtypeStruct((N, C, Lp), inter_dt), stat_shape],
        compiler_params=cparams,
    )(sc, wk1, params1)
    scale2, shift2 = _bn_fold(stats2, N * Lp, g2c, bt2c)
    params2 = jnp.stack([b2c, scale2, shift2], axis=0)     # (3, C, 1)

    # pass 3: BN2(affine)+ReLU+Conv2 + residual
    out = pl.pallas_call(
        _bn_relu_conv_residual_kernel,
        grid=(G,),
        in_specs=[act, act, wspec, pspec],
        out_specs=act,
        out_shape=jax.ShapeDtypeStruct((N, C, Lp), f32),
        compiler_params=cparams,
    )(y1, sc, wk2, params2)
    return out


# -------------------- pure-JAX reference (PyTorch semantics) --------------------

def ref_forward(x, w1, b1, g1, bt1, w2, b2, g2, bt2):
    xp = jnp.pad(x, ((0, 0), (0, 0), (0, 1)))                     # ConstantPad1d((0,1),0)
    sc = jax.lax.reduce_window(xp, -jnp.inf, jax.lax.max,
                               (1, 1, 3), (1, 1, 2), 'VALID')     # MaxPool1d(3, 2)

    def bn_relu(h, g, b):
        mean = jnp.mean(h, axis=(0, 2), keepdims=True)
        var = jnp.mean((h - mean) ** 2, axis=(0, 2), keepdims=True)
        hn = (h - mean) / jnp.sqrt(var + EPS)
        return jax.nn.relu(hn * g.reshape(1, -1, 1) + b.reshape(1, -1, 1))

    def conv(h, w, b):
        wt = jnp.transpose(w, (2, 1, 0))                          # (K,Ci,Co)->(Co,Ci,K)
        y = jax.lax.conv_general_dilated(
            h, wt, window_strides=(1,), padding=[(1, 1)],
            dimension_numbers=('NCH', 'OIH', 'NCH'))
        return y + b.reshape(1, -1, 1)

    h = bn_relu(sc, g1, bt1)
    h = conv(h, w1, b1)
    h = bn_relu(h, g2, bt2)
    h = conv(h, w2, b2)
    return h + sc


if __name__ == "__main__":
    N, C, L = 2, 4, 16
    key = jax.random.PRNGKey(0)
    ks = jax.random.split(key, 9)

    x = jax.random.normal(ks[0], (N, C, L), jnp.float32)

    w1 = 0.3 * jax.random.normal(ks[1], (3, C, C), jnp.float32)   # Conv1d #1 weight (k,ci,co)
    b1 = 0.1 * jax.random.normal(ks[2], (C,), jnp.float32)
    g1 = 1.0 + 0.1 * jax.random.normal(ks[3], (C,), jnp.float32)  # BN1 gamma
    bt1 = 0.1 * jax.random.normal(ks[4], (C,), jnp.float32)       # BN1 beta
    w2 = 0.3 * jax.random.normal(ks[5], (3, C, C), jnp.float32)   # Conv1d #2 weight
    b2 = 0.1 * jax.random.normal(ks[6], (C,), jnp.float32)
    g2 = 1.0 + 0.1 * jax.random.normal(ks[7], (C,), jnp.float32)  # BN2 gamma
    bt2 = 0.1 * jax.random.normal(ks[8], (C,), jnp.float32)       # BN2 beta

    out = resnet_block(x, w1, b1, g1, bt1, w2, b2, g2, bt2)
    out = jax.block_until_ready(out)

    ref = ref_forward(x, w1, b1, g1, bt1, w2, b2, g2, bt2)
    assert out.shape == (N, C, L // 2), out.shape
    err = float(jnp.max(jnp.abs(out - ref)))
    assert jnp.allclose(out, ref, atol=2e-4, rtol=2e-4), err

    print("KERNEL_OK")
</pallas_src>

<mosaic_0001>
module attributes {stable_mosaic.version = 11 : i64} {
  func.func @_pool_stats_kernel(%arg0: i32, %arg1: memref<2x4x8xf32, #tpu.memory_space<vmem>>, %arg2: memref<2x4x8xf32, #tpu.memory_space<vmem>>, %arg3: memref<2x4x8xf32, #tpu.memory_space<vmem>>, %arg4: memref<1x4x2xf32, #tpu.memory_space<vmem>>) attributes {dimension_semantics = [#tpu.dimension_semantics<parallel>], iteration_bounds = array<i64: 1>, scalar_prefetch = 0 : i64, scratch_operands = 0 : i64, tpu.core_type = #tpu.core_type<tc>, window_params = [{transform_indices = @transform_0, window_bounds = array<i64: 2, 4, 8>}, {transform_indices = @transform_1, window_bounds = array<i64: 2, 4, 8>}, {transform_indices = @transform_2, window_bounds = array<i64: 2, 4, 8>}, {transform_indices = @transform_3, window_bounds = array<i64: 1, 4, 2>}]} {
    %0 = tpu.iota {dimensions = array<i32: 1>} : vector<4x8xi32>
    %c7_i32 = arith.constant 7 : i32
    %1 = vector.broadcast %c7_i32 : i32 to vector<4x8xi32>
    %2 = arith.cmpi eq, %0, %1 : vector<4x8xi32>
    %cst = arith.constant 0.000000e+00 : f32
    %3 = vector.broadcast %cst : f32 to vector<4x1xf32>
    %cst_0 = arith.constant 0.000000e+00 : f32
    %4 = vector.broadcast %cst_0 : f32 to vector<4x1xf32>
    %c0 = arith.constant 0 : index
    %c0_1 = arith.constant 0 : index
    %c0_2 = arith.constant 0 : index
    %5 = vector.load %arg1[%c0, %c0_1, %c0_2] : memref<2x4x8xf32, #tpu.memory_space<vmem>>, vector<1x4x8xf32>
    %6 = vector.shape_cast %5 : vector<1x4x8xf32> to vector<4x8xf32>
    %c0_3 = arith.constant 0 : index
    %c0_4 = arith.constant 0 : index
    %c0_5 = arith.constant 0 : index
    %7 = vector.load %arg2[%c0_3, %c0_4, %c0_5] : memref<2x4x8xf32, #tpu.memory_space<vmem>>, vector<1x4x8xf32>
    %8 = vector.shape_cast %7 : vector<1x4x8xf32> to vector<4x8xf32>
    %c7_i32_6 = arith.constant 7 : i32
    %9 = tpu.dynamic_rotate %6 by %c7_i32_6 dim 1 : vector<4x8xf32>, i32 -> vector<4x8xf32>
    %cst_7 = arith.constant 0.000000e+00 : f32
    %10 = vector.broadcast %cst_7 : f32 to vector<4x8xf32>
    %11 = arith.select %2, %10, %9 : vector<4x8xi1>, vector<4x8xf32>
    %12 = arith.maximumf %6, %8 : vector<4x8xf32>
    %13 = arith.maximumf %12, %11 : vector<4x8xf32>
    %c0_8 = arith.constant 0 : index
    %c0_9 = arith.constant 0 : index
    %c0_10 = arith.constant 0 : index
    %14 = vector.load %arg3[%c0_8, %c0_9, %c0_10] : memref<2x4x8xf32, #tpu.memory_space<vmem>>, vector<1x4x8xf32>
    %15 = vector.shape_cast %14 : vector<1x4x8xf32> to vector<4x8xf32>
    %16 = vector.shape_cast %13 : vector<4x8xf32> to vector<1x4x8xf32>
    tpu.vector_store %arg3[%c0_8, %c0_9, %c0_10], %16 {strides = array<i32>} : memref<2x4x8xf32, #tpu.memory_space<vmem>>, vector<1x4x8xf32>,
    %cst_11 = arith.constant dense<0.000000e+00> : vector<4xf32>
    %17 = vector.multi_reduction <add>, %13, %cst_11 [1] : vector<4x8xf32> to vector<4xf32>
    %18 = vector.shape_cast %17 : vector<4xf32> to vector<4x1xf32>
    %19 = arith.addf %3, %18 : vector<4x1xf32>
    %20 = arith.mulf %13, %13 : vector<4x8xf32>
    %cst_12 = arith.constant dense<0.000000e+00> : vector<4xf32>
    %21 = vector.multi_reduction <add>, %20, %cst_12 [1] : vector<4x8xf32> to vector<4xf32>
    %22 = vector.shape_cast %21 : vector<4xf32> to vector<4x1xf32>
    %23 = arith.addf %4, %22 : vector<4x1xf32>
    %c1 = arith.constant 1 : index
    %c0_13 = arith.constant 0 : index
    %c0_14 = arith.constant 0 : index
    %24 = vector.load %arg1[%c1, %c0_13, %c0_14] : memref<2x4x8xf32, #tpu.memory_space<vmem>>, vector<1x4x8xf32>
    %25 = vector.shape_cast %24 : vector<1x4x8xf32> to vector<4x8xf32>
    %c1_15 = arith.constant 1 : index
    %c0_16 = arith.constant 0 : index
    %c0_17 = arith.constant 0 : index
    %26 = vector.load %arg2[%c1_15, %c0_16, %c0_17] : memref<2x4x8xf32, #tpu.memory_space<vmem>>, vector<1x4x8xf32>
    %27 = vector.shape_cast %26 : vector<1x4x8xf32> to vector<4x8xf32>
    %c7_i32_18 = arith.constant 7 : i32
    %28 = tpu.dynamic_rotate %25 by %c7_i32_18 dim 1 : vector<4x8xf32>, i32 -> vector<4x8xf32>
    %cst_19 = arith.constant 0.000000e+00 : f32
    %29 = vector.broadcast %cst_19 : f32 to vector<4x8xf32>
    %30 = arith.select %2, %29, %28 : vector<4x8xi1>, vector<4x8xf32>
    %31 = arith.maximumf %25, %27 : vector<4x8xf32>
    %32 = arith.maximumf %31, %30 : vector<4x8xf32>
    %c1_20 = arith.constant 1 : index
    %c0_21 = arith.constant 0 : index
    %c0_22 = arith.constant 0 : index
    %33 = vector.load %arg3[%c1_20, %c0_21, %c0_22] : memref<2x4x8xf32, #tpu.memory_space<vmem>>, vector<1x4x8xf32>
    %34 = vector.shape_cast %33 : vector<1x4x8xf32> to vector<4x8xf32>
    %35 = vector.shape_cast %32 : vector<4x8xf32> to vector<1x4x8xf32>
    tpu.vector_store %arg3[%c1_20, %c0_21, %c0_22], %35 {strides = array<i32>} : memref<2x4x8xf32, #tpu.memory_space<vmem>>, vector<1x4x8xf32>,
    %cst_23 = arith.constant dense<0.000000e+00> : vector<4xf32>
    %36 = vector.multi_reduction <add>, %32, %cst_23 [1] : vector<4x8xf32> to vector<4xf32>
    %37 = vector.shape_cast %36 : vector<4xf32> to vector<4x1xf32>
    %38 = arith.addf %19, %37 : vector<4x1xf32>
    %39 = arith.mulf %32, %32 : vector<4x8xf32>
    %cst_24 = arith.constant dense<0.000000e+00> : vector<4xf32>
    %40 = vector.multi_reduction <add>, %39, %cst_24 [1] : vector<4x8xf32> to vector<4xf32>
    %41 = vector.shape_cast %40 : vector<4xf32> to vector<4x1xf32>
    %42 = arith.addf %23, %41 : vector<4x1xf32>
    %c0_25 = arith.constant 0 : index
    %c0_26 = arith.constant 0 : index
    %c0_27 = arith.constant 0 : index
    %43 = vector.load %arg4[%c0_25, %c0_26, %c0_27] : memref<1x4x2xf32, #tpu.memory_space<vmem>>, vector<1x4x1xf32>
    %44 = vector.shape_cast %43 : vector<1x4x1xf32> to vector<4x1xf32>
    %45 = vector.shape_cast %38 : vector<4x1xf32> to vector<1x4x1xf32>
    tpu.vector_store %arg4[%c0_25, %c0_26, %c0_27], %45 {strides = array<i32>} : memref<1x4x2xf32, #tpu.memory_space<vmem>>, vector<1x4x1xf32>,
    %c0_28 = arith.constant 0 : index
    %c0_29 = arith.constant 0 : index
    %c1_30 = arith.constant 1 : index
    %46 = vector.load %arg4[%c0_28, %c0_29, %c1_30] : memref<1x4x2xf32, #tpu.memory_space<vmem>>, vector<1x4x1xf32>
    %47 = vector.shape_cast %46 : vector<1x4x1xf32> to vector<4x1xf32>
    %48 = vector.shape_cast %42 : vector<4x1xf32> to vector<1x4x1xf32>
    tpu.vector_store %arg4[%c0_28, %c0_29, %c1_30], %48 {strides = array<i32>} : memref<1x4x2xf32, #tpu.memory_space<vmem>>, vector<1x4x1xf32>,
    return
  }
  func.func @transform_0(%arg0: i32) -> (i32, i32, i32) {
    %c0_i32 = arith.constant 0 : i32
    %c0_i32_0 = arith.constant 0 : i32
    %c0_i32_1 = arith.constant 0 : i32
    return %arg0, %c0_i32, %c0_i32_0 : i32, i32, i32
  }
  func.func @transform_1(%arg0: i32) -> (i32, i32, i32) {
    %c0_i32 = arith.constant 0 : i32
    %c0_i32_0 = arith.constant 0 : i32
    %c0_i32_1 = arith.constant 0 : i32
    return %arg0, %c0_i32, %c0_i32_0 : i32, i32, i32
  }
  func.func @transform_2(%arg0: i32) -> (i32, i32, i32) {
    %c0_i32 = arith.constant 0 : i32
    %c0_i32_0 = arith.constant 0 : i32
    %c0_i32_1 = arith.constant 0 : i32
    return %arg0, %c0_i32, %c0_i32_0 : i32, i32, i32
  }
  func.func @transform_3(%arg0: i32) -> (i32, i32, i32) {
    %c0_i32 = arith.constant 0 : i32
    %c0_i32_0 = arith.constant 0 : i32
    %c0_i32_1 = arith.constant 0 : i32
    return %arg0, %c0_i32, %c0_i32_0 : i32, i32, i32
  }
}

module attributes {stable_mosaic.version = 11 : i64} {
  func.func @_bn_relu_conv_residual_kernel(%arg0: i32, %arg1: memref<2x4x8xf32, #tpu.memory_space<vmem>>, %arg2: memref<2x4x8xf32, #tpu.memory_space<vmem>>, %arg3: memref<3x4x4xf32, #tpu.memory_space<vmem>>, %arg4: memref<3x4x1xf32, #tpu.memory_space<vmem>>, %arg5: memref<2x4x8xf32, #tpu.memory_space<vmem>>) attributes {dimension_semantics = [#tpu.dimension_semantics<parallel>], iteration_bounds = array<i64: 1>, scalar_prefetch = 0 : i64, scratch_operands = 0 : i64, tpu.core_type = #tpu.core_type<tc>, window_params = [{transform_indices = @transform_0, window_bounds = array<i64: 2, 4, 8>}, {transform_indices = @transform_1, window_bounds = array<i64: 2, 4, 8>}, {pipeline_mode = #tpu.pipeline_mode<synchronous>, transform_indices = @transform_2, window_bounds = array<i64: 3, 4, 4>}, {pipeline_mode = #tpu.pipeline_mode<synchronous>, transform_indices = @transform_3, window_bounds = array<i64: 3, 4, 1>}, {transform_indices = @transform_4, window_bounds = array<i64: 2, 4, 8>}]} {
    %0 = tpu.iota {dimensions = array<i32: 1>} : vector<4x8xi32>
    %c0_i32 = arith.constant 0 : i32
    %1 = vector.broadcast %c0_i32 : i32 to vector<4x8xi32>
    %2 = arith.cmpi eq, %0, %1 : vector<4x8xi32>
    %c7_i32 = arith.constant 7 : i32
    %3 = vector.broadcast %c7_i32 : i32 to vector<4x8xi32>
    %4 = arith.cmpi eq, %0, %3 : vector<4x8xi32>
    %c0 = arith.constant 0 : index
    %c0_0 = arith.constant 0 : index
    %c0_1 = arith.constant 0 : index
    %5 = vector.load %arg4[%c0, %c0_0, %c0_1] : memref<3x4x1xf32, #tpu.memory_space<vmem>>, vector<1x4x1xf32>
    %6 = vector.shape_cast %5 : vector<1x4x1xf32> to vector<4x1xf32>
    %c1 = arith.constant 1 : index
    %c0_2 = arith.constant 0 : index
    %c0_3 = arith.constant 0 : index
    %7 = vector.load %arg4[%c1, %c0_2, %c0_3] : memref<3x4x1xf32, #tpu.memory_space<vmem>>, vector<1x4x1xf32>
    %8 = vector.shape_cast %7 : vector<1x4x1xf32> to vector<4x1xf32>
    %c2 = arith.constant 2 : index
    %c0_4 = arith.constant 0 : index
    %c0_5 = arith.constant 0 : index
    %9 = vector.load %arg4[%c2, %c0_4, %c0_5] : memref<3x4x1xf32, #tpu.memory_space<vmem>>, vector<1x4x1xf32>
    %10 = vector.shape_cast %9 : vector<1x4x1xf32> to vector<4x1xf32>
    %c0_6 = arith.constant 0 : index
    %c0_7 = arith.constant 0 : index
    %c0_8 = arith.constant 0 : index
    %11 = vector.load %arg1[%c0_6, %c0_7, %c0_8] : memref<2x4x8xf32, #tpu.memory_space<vmem>>, vector<1x4x8xf32>
    %12 = vector.shape_cast %11 : vector<1x4x8xf32> to vector<4x8xf32>
    %13 = vector.broadcast %8 : vector<4x1xf32> to vector<4x8xf32>
    %14 = arith.mulf %12, %13 : vector<4x8xf32>
    %15 = vector.broadcast %10 : vector<4x1xf32> to vector<4x8xf32>
    %16 = arith.addf %14, %15 : vector<4x8xf32>
    %cst = arith.constant 0.000000e+00 : f32
    %17 = vector.broadcast %cst : f32 to vector<4x8xf32>
    %18 = arith.maximumf %16, %17 : vector<4x8xf32>
    %c1_i32 = arith.constant 1 : i32
    %19 = tpu.dynamic_rotate %18 by %c1_i32 dim 1 : vector<4x8xf32>, i32 -> vector<4x8xf32>
    %cst_9 = arith.constant 0.000000e+00 : f32
    %20 = vector.broadcast %cst_9 : f32 to vector<4x8xf32>
    %21 = arith.select %2, %20, %19 : vector<4x8xi1>, vector<4x8xf32>
    %c7_i32_10 = arith.constant 7 : i32
    %22 = tpu.dynamic_rotate %18 by %c7_i32_10 dim 1 : vector<4x8xf32>, i32 -> vector<4x8xf32>
    %cst_11 = arith.constant 0.000000e+00 : f32
    %23 = vector.broadcast %cst_11 : f32 to vector<4x8xf32>
    %24 = arith.select %4, %23, %22 : vector<4x8xi1>, vector<4x8xf32>
    %c1_12 = arith.constant 1 : index
    %c0_13 = arith.constant 0 : index
    %c0_14 = arith.constant 0 : index
    %25 = vector.load %arg3[%c1_12, %c0_13, %c0_14] : memref<3x4x4xf32, #tpu.memory_space<vmem>>, vector<1x4x4xf32>
    %26 = vector.shape_cast %25 : vector<1x4x4xf32> to vector<4x4xf32>
    %cst_15 = arith.constant dense<0.000000e+00> : vector<4x8xf32>
    %27 = tpu.matmul %26, %18, %cst_15 {dimension_numbers = #tpu.dot_dimension_numbers<[1], [0], [0], [1], [0, 0, 1, 1], [], []>} : vector<4x4xf32>, vector<4x8xf32>, vector<4x8xf32> -> vector<4x8xf32>
    %28 = vector.broadcast %6 : vector<4x1xf32> to vector<4x8xf32>
    %29 = arith.addf %27, %28 : vector<4x8xf32>
    %c0_16 = arith.constant 0 : index
    %c0_17 = arith.constant 0 : index
    %c0_18 = arith.constant 0 : index
    %30 = vector.load %arg3[%c0_16, %c0_17, %c0_18] : memref<3x4x4xf32, #tpu.memory_space<vmem>>, vector<1x4x4xf32>
    %31 = vector.shape_cast %30 : vector<1x4x4xf32> to vector<4x4xf32>
    %cst_19 = arith.constant dense<0.000000e+00> : vector<4x8xf32>
    %32 = tpu.matmul %31, %21, %cst_19 {dimension_numbers = #tpu.dot_dimension_numbers<[1], [0], [0], [1], [0, 0, 1, 1], [], []>} : vector<4x4xf32>, vector<4x8xf32>, vector<4x8xf32> -> vector<4x8xf32>
    %33 = arith.addf %29, %32 : vector<4x8xf32>
    %c2_20 = arith.constant 2 : index
    %c0_21 = arith.constant 0 : index
    %c0_22 = arith.constant 0 : index
    %34 = vector.load %arg3[%c2_20, %c0_21, %c0_22] : memref<3x4x4xf32, #tpu.memory_space<vmem>>, vector<1x4x4xf32>
    %35 = vector.shape_cast %34 : vector<1x4x4xf32> to vector<4x4xf32>
    %cst_23 = arith.constant dense<0.000000e+00> : vector<4x8xf32>
    %36 = tpu.matmul %35, %24, %cst_23 {dimension_numbers = #tpu.dot_dimension_numbers<[1], [0], [0], [1], [0, 0, 1, 1], [], []>} : vector<4x4xf32>, vector<4x8xf32>, vector<4x8xf32> -> vector<4x8xf32>
    %37 = arith.addf %33, %36 : vector<4x8xf32>
    %c0_24 = arith.constant 0 : index
    %c0_25 = arith.constant 0 : index
    %c0_26 = arith.constant 0 : index
    %38 = vector.load %arg2[%c0_24, %c0_25, %c0_26] : memref<2x4x8xf32, #tpu.memory_space<vmem>>, vector<1x4x8xf32>
    %39 = vector.shape_cast %38 : vector<1x4x8xf32> to vector<4x8xf32>
    %40 = arith.addf %37, %39 : vector<4x8xf32>
    %c0_27 = arith.constant 0 : index
    %c0_28 = arith.constant 0 : index
    %c0_29 = arith.constant 0 : index
    %41 = vector.load %arg5[%c0_27, %c0_28, %c0_29] : memref<2x4x8xf32, #tpu.memory_space<vmem>>, vector<1x4x8xf32>
    %42 = vector.shape_cast %41 : vector<1x4x8xf32> to vector<4x8xf32>
    %43 = vector.shape_cast %40 : vector<4x8xf32> to vector<1x4x8xf32>
    tpu.vector_store %arg5[%c0_27, %c0_28, %c0_29], %43 {strides = array<i32>} : memref<2x4x8xf32, #tpu.memory_space<vmem>>, vector<1x4x8xf32>,
    %c1_30 = arith.constant 1 : index
    %c0_31 = arith.constant 0 : index
    %c0_32 = arith.constant 0 : index
    %44 = vector.load %arg1[%c1_30, %c0_31, %c0_32] : memref<2x4x8xf32, #tpu.memory_space<vmem>>, vector<1x4x8xf32>
    %45 = vector.shape_cast %44 : vector<1x4x8xf32> to vector<4x8xf32>
    %46 = vector.broadcast %8 : vector<4x1xf32> to vector<4x8xf32>
    %47 = arith.mulf %45, %46 : vector<4x8xf32>
    %48 = vector.broadcast %10 : vector<4x1xf32> to vector<4x8xf32>
    %49 = arith.addf %47, %48 : vector<4x8xf32>
    %cst_33 = arith.constant 0.000000e+00 : f32
    %50 = vector.broadcast %cst_33 : f32 to vector<4x8xf32>
    %51 = arith.maximumf %49, %50 : vector<4x8xf32>
    %c1_i32_34 = arith.constant 1 : i32
    %52 = tpu.dynamic_rotate %51 by %c1_i32_34 dim 1 : vector<4x8xf32>, i32 -> vector<4x8xf32>
    %cst_35 = arith.constant 0.000000e+00 : f32
    %53 = vector.broadcast %cst_35 : f32 to vector<4x8xf32>
    %54 = arith.select %2, %53, %52 : vector<4x8xi1>, vector<4x8xf32>
    %c7_i32_36 = arith.constant 7 : i32
    %55 = tpu.dynamic_rotate %51 by %c7_i32_36 dim 1 : vector<4x8xf32>, i32 -> vector<4x8xf32>
    %cst_37 = arith.constant 0.000000e+00 : f32
    %56 = vector.broadcast %cst_37 : f32 to vector<4x8xf32>
    %57 = arith.select %4, %56, %55 : vector<4x8xi1>, vector<4x8xf32>
    %c1_38 = arith.constant 1 : index
    %c0_39 = arith.constant 0 : index
    %c0_40 = arith.constant 0 : index
    %58 = vector.load %arg3[%c1_38, %c0_39, %c0_40] : memref<3x4x4xf32, #tpu.memory_space<vmem>>, vector<1x4x4xf32>
    %59 = vector.shape_cast %58 : vector<1x4x4xf32> to vector<4x4xf32>
    %cst_41 = arith.constant dense<0.000000e+00> : vector<4x8xf32>
    %60 = tpu.matmul %59, %51, %cst_41 {dimension_numbers = #tpu.dot_dimension_numbers<[1], [0], [0], [1], [0, 0, 1, 1], [], []>} : vector<4x4xf32>, vector<4x8xf32>, vector<4x8xf32> -> vector<4x8xf32>
    %61 = vector.broadcast %6 : vector<4x1xf32> to vector<4x8xf32>
    %62 = arith.addf %60, %61 : vector<4x8xf32>
    %c0_42 = arith.constant 0 : index
    %c0_43 = arith.constant 0 : index
    %c0_44 = arith.constant 0 : index
    %63 = vector.load %arg3[%c0_42, %c0_43, %c0_44] : memref<3x4x4xf32, #tpu.memory_space<vmem>>, vector<1x4x4xf32>
    %64 = vector.shape_cast %63 : vector<1x4x4xf32> to vector<4x4xf32>
    %cst_45 = arith.constant dense<0.000000e+00> : vector<4x8xf32>
    %65 = tpu.matmul %64, %54, %cst_45 {dimension_numbers = #tpu.dot_dimension_numbers<[1], [0], [0], [1], [0, 0, 1, 1], [], []>} : vector<4x4xf32>, vector<4x8xf32>, vector<4x8xf32> -> vector<4x8xf32>
    %66 = arith.addf %62, %65 : vector<4x8xf32>
    %c2_46 = arith.constant 2 : index
    %c0_47 = arith.constant 0 : index
    %c0_48 = arith.constant 0 : index
    %67 = vector.load %arg3[%c2_46, %c0_47, %c0_48] : memref<3x4x4xf32, #tpu.memory_space<vmem>>, vector<1x4x4xf32>
    %68 = vector.shape_cast %67 : vector<1x4x4xf32> to vector<4x4xf32>
    %cst_49 = arith.constant dense<0.000000e+00> : vector<4x8xf32>
    %69 = tpu.matmul %68, %57, %cst_49 {dimension_numbers = #tpu.dot_dimension_numbers<[1], [0], [0], [1], [0, 0, 1, 1], [], []>} : vector<4x4xf32>, vector<4x8xf32>, vector<4x8xf32> -> vector<4x8xf32>
    %70 = arith.addf %66, %69 : vector<4x8xf32>
    %c1_50 = arith.constant 1 : index
    %c0_51 = arith.constant 0 : index
    %c0_52 = arith.constant 0 : index
    %71 = vector.load %arg2[%c1_50, %c0_51, %c0_52] : memref<2x4x8xf32, #tpu.memory_space<vmem>>, vector<1x4x8xf32>
    %72 = vector.shape_cast %71 : vector<1x4x8xf32> to vector<4x8xf32>
    %73 = arith.addf %70, %72 : vector<4x8xf32>
    %c1_53 = arith.constant 1 : index
    %c0_54 = arith.constant 0 : index
    %c0_55 = arith.constant 0 : index
    %74 = vector.load %arg5[%c1_53, %c0_54, %c0_55] : memref<2x4x8xf32, #tpu.memory_space<vmem>>, vector<1x4x8xf32>
    %75 = vector.shape_cast %74 : vector<1x4x8xf32> to vector<4x8xf32>
    %76 = vector.shape_cast %73 : vector<4x8xf32> to vector<1x4x8xf32>
    tpu.vector_store %arg5[%c1_53, %c0_54, %c0_55], %76 {strides = array<i32>} : memref<2x4x8xf32, #tpu.memory_space<vmem>>, vector<1x4x8xf32>,
    return
  }
  func.func @transform_0(%arg0: i32) -> (i32, i32, i32) {
    %c0_i32 = arith.constant 0 : i32
    %c0_i32_0 = arith.constant 0 : i32
    %c0_i32_1 = arith.constant 0 : i32
    return %arg0, %c0_i32, %c0_i32_0 : i32, i32, i32
  }
  func.func @transform_1(%arg0: i32) -> (i32, i32, i32) {
    %c0_i32 = arith.constant 0 : i32
    %c0_i32_0 = arith.constant 0 : i32
    %c0_i32_1 = arith.constant 0 : i32
    return %arg0, %c0_i32, %c0_i32_0 : i32, i32, i32
  }
  func.func @transform_2(%arg0: i32) -> (i32, i32, i32) {
    %c0_i32 = arith.constant 0 : i32
    %c0_i32_0 = arith.constant 0 : i32
    %c0_i32_1 = arith.constant 0 : i32
    %c0_i32_2 = arith.constant 0 : i32
    return %c0_i32, %c0_i32_0, %c0_i32_1 : i32, i32, i32
  }
  func.func @transform_3(%arg0: i32) -> (i32, i32, i32) {
    %c0_i32 = arith.constant 0 : i32
    %c0_i32_0 = arith.constant 0 : i32
    %c0_i32_1 = arith.constant 0 : i32
    %c0_i32_2 = arith.constant 0 : i32
    return %c0_i32, %c0_i32_0, %c0_i32_1 : i32, i32, i32
  }
  func.func @transform_4(%arg0: i32) -> (i32, i32, i32) {
    %c0_i32 = arith.constant 0 : i32
    %c0_i32_0 = arith.constant 0 : i32
    %c0_i32_1 = arith.constant 0 : i32
    return %arg0, %c0_i32, %c0_i32_0 : i32, i32, i32
  }
}

module attributes {stable_mosaic.version = 11 : i64} {
  func.func @_bn_relu_conv_stats_kernel(%arg0: i32, %arg1: memref<2x4x8xf32, #tpu.memory_space<vmem>>, %arg2: memref<3x4x4xf32, #tpu.memory_space<vmem>>, %arg3: memref<3x4x1xf32, #tpu.memory_space<vmem>>, %arg4: memref<2x4x8xf32, #tpu.memory_space<vmem>>, %arg5: memref<1x4x2xf32, #tpu.memory_space<vmem>>) attributes {dimension_semantics = [#tpu.dimension_semantics<parallel>], iteration_bounds = array<i64: 1>, scalar_prefetch = 0 : i64, scratch_operands = 0 : i64, tpu.core_type = #tpu.core_type<tc>, window_params = [{transform_indices = @transform_0, window_bounds = array<i64: 2, 4, 8>}, {pipeline_mode = #tpu.pipeline_mode<synchronous>, transform_indices = @transform_1, window_bounds = array<i64: 3, 4, 4>}, {pipeline_mode = #tpu.pipeline_mode<synchronous>, transform_indices = @transform_2, window_bounds = array<i64: 3, 4, 1>}, {transform_indices = @transform_3, window_bounds = array<i64: 2, 4, 8>}, {transform_indices = @transform_4, window_bounds = array<i64: 1, 4, 2>}]} {
    %0 = tpu.iota {dimensions = array<i32: 1>} : vector<4x8xi32>
    %c0_i32 = arith.constant 0 : i32
    %1 = vector.broadcast %c0_i32 : i32 to vector<4x8xi32>
    %2 = arith.cmpi eq, %0, %1 : vector<4x8xi32>
    %c7_i32 = arith.constant 7 : i32
    %3 = vector.broadcast %c7_i32 : i32 to vector<4x8xi32>
    %4 = arith.cmpi eq, %0, %3 : vector<4x8xi32>
    %c0 = arith.constant 0 : index
    %c0_0 = arith.constant 0 : index
    %c0_1 = arith.constant 0 : index
    %5 = vector.load %arg3[%c0, %c0_0, %c0_1] : memref<3x4x1xf32, #tpu.memory_space<vmem>>, vector<1x4x1xf32>
    %6 = vector.shape_cast %5 : vector<1x4x1xf32> to vector<4x1xf32>
    %c1 = arith.constant 1 : index
    %c0_2 = arith.constant 0 : index
    %c0_3 = arith.constant 0 : index
    %7 = vector.load %arg3[%c1, %c0_2, %c0_3] : memref<3x4x1xf32, #tpu.memory_space<vmem>>, vector<1x4x1xf32>
    %8 = vector.shape_cast %7 : vector<1x4x1xf32> to vector<4x1xf32>
    %c2 = arith.constant 2 : index
    %c0_4 = arith.constant 0 : index
    %c0_5 = arith.constant 0 : index
    %9 = vector.load %arg3[%c2, %c0_4, %c0_5] : memref<3x4x1xf32, #tpu.memory_space<vmem>>, vector<1x4x1xf32>
    %10 = vector.shape_cast %9 : vector<1x4x1xf32> to vector<4x1xf32>
    %cst = arith.constant 0.000000e+00 : f32
    %11 = vector.broadcast %cst : f32 to vector<4x1xf32>
    %cst_6 = arith.constant 0.000000e+00 : f32
    %12 = vector.broadcast %cst_6 : f32 to vector<4x1xf32>
    %c0_7 = arith.constant 0 : index
    %c0_8 = arith.constant 0 : index
    %c0_9 = arith.constant 0 : index
    %13 = vector.load %arg1[%c0_7, %c0_8, %c0_9] : memref<2x4x8xf32, #tpu.memory_space<vmem>>, vector<1x4x8xf32>
    %14 = vector.shape_cast %13 : vector<1x4x8xf32> to vector<4x8xf32>
    %15 = vector.broadcast %8 : vector<4x1xf32> to vector<4x8xf32>
    %16 = arith.mulf %14, %15 : vector<4x8xf32>
    %17 = vector.broadcast %10 : vector<4x1xf32> to vector<4x8xf32>
    %18 = arith.addf %16, %17 : vector<4x8xf32>
    %cst_10 = arith.constant 0.000000e+00 : f32
    %19 = vector.broadcast %cst_10 : f32 to vector<4x8xf32>
    %20 = arith.maximumf %18, %19 : vector<4x8xf32>
    %c1_i32 = arith.constant 1 : i32
    %21 = tpu.dynamic_rotate %20 by %c1_i32 dim 1 : vector<4x8xf32>, i32 -> vector<4x8xf32>
    %cst_11 = arith.constant 0.000000e+00 : f32
    %22 = vector.broadcast %cst_11 : f32 to vector<4x8xf32>
    %23 = arith.select %2, %22, %21 : vector<4x8xi1>, vector<4x8xf32>
    %c7_i32_12 = arith.constant 7 : i32
    %24 = tpu.dynamic_rotate %20 by %c7_i32_12 dim 1 : vector<4x8xf32>, i32 -> vector<4x8xf32>
    %cst_13 = arith.constant 0.000000e+00 : f32
    %25 = vector.broadcast %cst_13 : f32 to vector<4x8xf32>
    %26 = arith.select %4, %25, %24 : vector<4x8xi1>, vector<4x8xf32>
    %c1_14 = arith.constant 1 : index
    %c0_15 = arith.constant 0 : index
    %c0_16 = arith.constant 0 : index
    %27 = vector.load %arg2[%c1_14, %c0_15, %c0_16] : memref<3x4x4xf32, #tpu.memory_space<vmem>>, vector<1x4x4xf32>
    %28 = vector.shape_cast %27 : vector<1x4x4xf32> to vector<4x4xf32>
    %cst_17 = arith.constant dense<0.000000e+00> : vector<4x8xf32>
    %29 = tpu.matmul %28, %20, %cst_17 {dimension_numbers = #tpu.dot_dimension_numbers<[1], [0], [0], [1], [0, 0, 1, 1], [], []>} : vector<4x4xf32>, vector<4x8xf32>, vector<4x8xf32> -> vector<4x8xf32>
    %30 = vector.broadcast %6 : vector<4x1xf32> to vector<4x8xf32>
    %31 = arith.addf %29, %30 : vector<4x8xf32>
    %c0_18 = arith.constant 0 : index
    %c0_19 = arith.constant 0 : index
    %c0_20 = arith.constant 0 : index
    %32 = vector.load %arg2[%c0_18, %c0_19, %c0_20] : memref<3x4x4xf32, #tpu.memory_space<vmem>>, vector<1x4x4xf32>
    %33 = vector.shape_cast %32 : vector<1x4x4xf32> to vector<4x4xf32>
    %cst_21 = arith.constant dense<0.000000e+00> : vector<4x8xf32>
    %34 = tpu.matmul %33, %23, %cst_21 {dimension_numbers = #tpu.dot_dimension_numbers<[1], [0], [0], [1], [0, 0, 1, 1], [], []>} : vector<4x4xf32>, vector<4x8xf32>, vector<4x8xf32> -> vector<4x8xf32>
    %35 = arith.addf %31, %34 : vector<4x8xf32>
    %c2_22 = arith.constant 2 : index
    %c0_23 = arith.constant 0 : index
    %c0_24 = arith.constant 0 : index
    %36 = vector.load %arg2[%c2_22, %c0_23, %c0_24] : memref<3x4x4xf32, #tpu.memory_space<vmem>>, vector<1x4x4xf32>
    %37 = vector.shape_cast %36 : vector<1x4x4xf32> to vector<4x4xf32>
    %cst_25 = arith.constant dense<0.000000e+00> : vector<4x8xf32>
    %38 = tpu.matmul %37, %26, %cst_25 {dimension_numbers = #tpu.dot_dimension_numbers<[1], [0], [0], [1], [0, 0, 1, 1], [], []>} : vector<4x4xf32>, vector<4x8xf32>, vector<4x8xf32> -> vector<4x8xf32>
    %39 = arith.addf %35, %38 : vector<4x8xf32>
    %c0_26 = arith.constant 0 : index
    %c0_27 = arith.constant 0 : index
    %c0_28 = arith.constant 0 : index
    %40 = vector.load %arg4[%c0_26, %c0_27, %c0_28] : memref<2x4x8xf32, #tpu.memory_space<vmem>>, vector<1x4x8xf32>
    %41 = vector.shape_cast %40 : vector<1x4x8xf32> to vector<4x8xf32>
    %42 = vector.shape_cast %39 : vector<4x8xf32> to vector<1x4x8xf32>
    tpu.vector_store %arg4[%c0_26, %c0_27, %c0_28], %42 {strides = array<i32>} : memref<2x4x8xf32, #tpu.memory_space<vmem>>, vector<1x4x8xf32>,
    %cst_29 = arith.constant dense<0.000000e+00> : vector<4xf32>
    %43 = vector.multi_reduction <add>, %39, %cst_29 [1] : vector<4x8xf32> to vector<4xf32>
    %44 = vector.shape_cast %43 : vector<4xf32> to vector<4x1xf32>
    %45 = arith.addf %11, %44 : vector<4x1xf32>
    %46 = arith.mulf %39, %39 : vector<4x8xf32>
    %cst_30 = arith.constant dense<0.000000e+00> : vector<4xf32>
    %47 = vector.multi_reduction <add>, %46, %cst_30 [1] : vector<4x8xf32> to vector<4xf32>
    %48 = vector.shape_cast %47 : vector<4xf32> to vector<4x1xf32>
    %49 = arith.addf %12, %48 : vector<4x1xf32>
    %c1_31 = arith.constant 1 : index
    %c0_32 = arith.constant 0 : index
    %c0_33 = arith.constant 0 : index
    %50 = vector.load %arg1[%c1_31, %c0_32, %c0_33] : memref<2x4x8xf32, #tpu.memory_space<vmem>>, vector<1x4x8xf32>
    %51 = vector.shape_cast %50 : vector<1x4x8xf32> to vector<4x8xf32>
    %52 = vector.broadcast %8 : vector<4x1xf32> to vector<4x8xf32>
    %53 = arith.mulf %51, %52 : vector<4x8xf32>
    %54 = vector.broadcast %10 : vector<4x1xf32> to vector<4x8xf32>
    %55 = arith.addf %53, %54 : vector<4x8xf32>
    %cst_34 = arith.constant 0.000000e+00 : f32
    %56 = vector.broadcast %cst_34 : f32 to vector<4x8xf32>
    %57 = arith.maximumf %55, %56 : vector<4x8xf32>
    %c1_i32_35 = arith.constant 1 : i32
    %58 = tpu.dynamic_rotate %57 by %c1_i32_35 dim 1 : vector<4x8xf32>, i32 -> vector<4x8xf32>
    %cst_36 = arith.constant 0.000000e+00 : f32
    %59 = vector.broadcast %cst_36 : f32 to vector<4x8xf32>
    %60 = arith.select %2, %59, %58 : vector<4x8xi1>, vector<4x8xf32>
    %c7_i32_37 = arith.constant 7 : i32
    %61 = tpu.dynamic_rotate %57 by %c7_i32_37 dim 1 : vector<4x8xf32>, i32 -> vector<4x8xf32>
    %cst_38 = arith.constant 0.000000e+00 : f32
    %62 = vector.broadcast %cst_38 : f32 to vector<4x8xf32>
    %63 = arith.select %4, %62, %61 : vector<4x8xi1>, vector<4x8xf32>
    %c1_39 = arith.constant 1 : index
    %c0_40 = arith.constant 0 : index
    %c0_41 = arith.constant 0 : index
    %64 = vector.load %arg2[%c1_39, %c0_40, %c0_41] : memref<3x4x4xf32, #tpu.memory_space<vmem>>, vector<1x4x4xf32>
    %65 = vector.shape_cast %64 : vector<1x4x4xf32> to vector<4x4xf32>
    %cst_42 = arith.constant dense<0.000000e+00> : vector<4x8xf32>
    %66 = tpu.matmul %65, %57, %cst_42 {dimension_numbers = #tpu.dot_dimension_numbers<[1], [0], [0], [1], [0, 0, 1, 1], [], []>} : vector<4x4xf32>, vector<4x8xf32>, vector<4x8xf32> -> vector<4x8xf32>
    %67 = vector.broadcast %6 : vector<4x1xf32> to vector<4x8xf32>
    %68 = arith.addf %66, %67 : vector<4x8xf32>
    %c0_43 = arith.constant 0 : index
    %c0_44 = arith.constant 0 : index
    %c0_45 = arith.constant 0 : index
    %69 = vector.load %arg2[%c0_43, %c0_44, %c0_45] : memref<3x4x4xf32, #tpu.memory_space<vmem>>, vector<1x4x4xf32>
    %70 = vector.shape_cast %69 : vector<1x4x4xf32> to vector<4x4xf32>
    %cst_46 = arith.constant dense<0.000000e+00> : vector<4x8xf32>
    %71 = tpu.matmul %70, %60, %cst_46 {dimension_numbers = #tpu.dot_dimension_numbers<[1], [0], [0], [1], [0, 0, 1, 1], [], []>} : vector<4x4xf32>, vector<4x8xf32>, vector<4x8xf32> -> vector<4x8xf32>
    %72 = arith.addf %68, %71 : vector<4x8xf32>
    %c2_47 = arith.constant 2 : index
    %c0_48 = arith.constant 0 : index
    %c0_49 = arith.constant 0 : index
    %73 = vector.load %arg2[%c2_47, %c0_48, %c0_49] : memref<3x4x4xf32, #tpu.memory_space<vmem>>, vector<1x4x4xf32>
    %74 = vector.shape_cast %73 : vector<1x4x4xf32> to vector<4x4xf32>
    %cst_50 = arith.constant dense<0.000000e+00> : vector<4x8xf32>
    %75 = tpu.matmul %74, %63, %cst_50 {dimension_numbers = #tpu.dot_dimension_numbers<[1], [0], [0], [1], [0, 0, 1, 1], [], []>} : vector<4x4xf32>, vector<4x8xf32>, vector<4x8xf32> -> vector<4x8xf32>
    %76 = arith.addf %72, %75 : vector<4x8xf32>
    %c1_51 = arith.constant 1 : index
    %c0_52 = arith.constant 0 : index
    %c0_53 = arith.constant 0 : index
    %77 = vector.load %arg4[%c1_51, %c0_52, %c0_53] : memref<2x4x8xf32, #tpu.memory_space<vmem>>, vector<1x4x8xf32>
    %78 = vector.shape_cast %77 : vector<1x4x8xf32> to vector<4x8xf32>
    %79 = vector.shape_cast %76 : vector<4x8xf32> to vector<1x4x8xf32>
    tpu.vector_store %arg4[%c1_51, %c0_52, %c0_53], %79 {strides = array<i32>} : memref<2x4x8xf32, #tpu.memory_space<vmem>>, vector<1x4x8xf32>,
    %cst_54 = arith.constant dense<0.000000e+00> : vector<4xf32>
    %80 = vector.multi_reduction <add>, %76, %cst_54 [1] : vector<4x8xf32> to vector<4xf32>
    %81 = vector.shape_cast %80 : vector<4xf32> to vector<4x1xf32>
    %82 = arith.addf %45, %81 : vector<4x1xf32>
    %83 = arith.mulf %76, %76 : vector<4x8xf32>
    %cst_55 = arith.constant dense<0.000000e+00> : vector<4xf32>
    %84 = vector.multi_reduction <add>, %83, %cst_55 [1] : vector<4x8xf32> to vector<4xf32>
    %85 = vector.shape_cast %84 : vector<4xf32> to vector<4x1xf32>
    %86 = arith.addf %49, %85 : vector<4x1xf32>
    %c0_56 = arith.constant 0 : index
    %c0_57 = arith.constant 0 : index
    %c0_58 = arith.constant 0 : index
    %87 = vector.load %arg5[%c0_56, %c0_57, %c0_58] : memref<1x4x2xf32, #tpu.memory_space<vmem>>, vector<1x4x1xf32>
    %88 = vector.shape_cast %87 : vector<1x4x1xf32> to vector<4x1xf32>
    %89 = vector.shape_cast %82 : vector<4x1xf32> to vector<1x4x1xf32>
    tpu.vector_store %arg5[%c0_56, %c0_57, %c0_58], %89 {strides = array<i32>} : memref<1x4x2xf32, #tpu.memory_space<vmem>>, vector<1x4x1xf32>,
    %c0_59 = arith.constant 0 : index
    %c0_60 = arith.constant 0 : index
    %c1_61 = arith.constant 1 : index
    %90 = vector.load %arg5[%c0_59, %c0_60, %c1_61] : memref<1x4x2xf32, #tpu.memory_space<vmem>>, vector<1x4x1xf32>
    %91 = vector.shape_cast %90 : vector<1x4x1xf32> to vector<4x1xf32>
    %92 = vector.shape_cast %86 : vector<4x1xf32> to vector<1x4x1xf32>
    tpu.vector_store %arg5[%c0_59, %c0_60, %c1_61], %92 {strides = array<i32>} : memref<1x4x2xf32, #tpu.memory_space<vmem>>, vector<1x4x1xf32>,
    return
  }
  func.func @transform_0(%arg0: i32) -> (i32, i32, i32) {
    %c0_i32 = arith.constant 0 : i32
    %c0_i32_0 = arith.constant 0 : i32
    %c0_i32_1 = arith.constant 0 : i32
    return %arg0, %c0_i32, %c0_i32_0 : i32, i32, i32
  }
  func.func @transform_1(%arg0: i32) -> (i32, i32, i32) {
    %c0_i32 = arith.constant 0 : i32
    %c0_i32_0 = arith.constant 0 : i32
    %c0_i32_1 = arith.constant 0 : i32
    %c0_i32_2 = arith.constant 0 : i32
    return %c0_i32, %c0_i32_0, %c0_i32_1 : i32, i32, i32
  }
  func.func @transform_2(%arg0: i32) -> (i32, i32, i32) {
    %c0_i32 = arith.constant 0 : i32
    %c0_i32_0 = arith.constant 0 : i32
    %c0_i32_1 = arith.constant 0 : i32
    %c0_i32_2 = arith.constant 0 : i32
    return %c0_i32, %c0_i32_0, %c0_i32_1 : i32, i32, i32
  }
  func.func @transform_3(%arg0: i32) -> (i32, i32, i32) {
    %c0_i32 = arith.constant 0 : i32
    %c0_i32_0 = arith.constant 0 : i32
    %c0_i32_1 = arith.constant 0 : i32
    return %arg0, %c0_i32, %c0_i32_0 : i32, i32, i32
  }
  func.func @transform_4(%arg0: i32) -> (i32, i32, i32) {
    %c0_i32 = arith.constant 0 : i32
    %c0_i32_0 = arith.constant 0 : i32
    %c0_i32_1 = arith.constant 0 : i32
    return %arg0, %c0_i32, %c0_i32_0 : i32, i32, i32
  }
}

</mosaic_0001>

<bundles_post_ra>
// kernel: resnet_block.3
= control target key start
LH: loop header
LB: loop body
LE: loop exit
PB: predicated region body
PF: predicated region fallthrough
CT: control target
= control target key end

     0   :  { %s88_s14 = smov 8   ;;  %vm18_vm0 = vcmask 1047616   ;;  %s89_s17 = smov 127   ;;  %v13_v10 = vlaneseq  ;;  %vm32_vm2 = vcmask 60416   ;;  %vm71_vm3 = vcmask 3072   ;;  %s140_s0 = inlined_call_operand.vmem [shape: f32[2,4,8], index: 0, kind: input, shape index: {}]   ;;  %s141_s1 = inlined_call_operand.vmem [shape: f32[2,4,8], index: 1, kind: input, shape index: {}]   ;;  %s142_s2 = inlined_call_operand.vmem [shape: f32[2,4,8], index: 2, kind: output, shape index: {0}]   ;;  %s143_s3 = inlined_call_operand.vmem [shape: f32[1,4,2], index: 3, kind: output, shape index: {1}]  }
   0x1   :  { %v16_v0 = vld [vmem:[%s140_s0] sm:$0xf]  ;;  %v83_v1 = vld [vmem:[%s140_s0 + $0x4] sm:$0xf]  ;;  %vm73_vm4 = vcmask 11272  }
   0x2   :  { %19 = vrot.lane.b32.xlu0 %v16_v0, %s88_s14  ;;  %v14_v11 = vand.u32 127, %v13_v10  ;;  %v17_v12 = vld [vmem:[%s141_s1] sm:$0xf]  ;;  %v84_v14 = vld [vmem:[%s141_s1 + $0x4] sm:$0xf] }
   0x3   :  { %v30_v13 = vmax.f32 %v16_v0, %v17_v12  ;;  %v58_v18 = vmax.f32 %v83_v1, %v84_v14 }
   0x4   :  { %vm15_vm1 = vcmp.eq.s32.totalorder %v14_v11, 7 }
   0x6   :  { %47 = vrot.lane.b32.xlu0 %v83_v1, %s88_s14 }
  0x74   :  { %v20_v2 = vpop.permute.xlu0 %19 }
  0x75   :  { %v21_v3 = vsel %vm18_vm0, %v20_v2, %v16_v0 }
  0x76   :  { %22 = vrot.lane.b32.xlu1 %v21_v3, %s88_s14 }
  0x78   :  { %v48_v4 = vpop.permute.xlu0 %47 }
  0x79   :  { %v49_v5 = vsel %vm18_vm0, %v48_v4, %v83_v1 }
  0x7a   :  { %50 = vrot.lane.b32.xlu1 %v49_v5, %s88_s14 }
  0xe8   :  { %v23_v6 = vpop.permute.xlu1 %22 }
  0xe9   :  { %v24_v7 = vsel %vm18_vm0, %v23_v6, %v16_v0 }
  0xea   :  { %26 = vrot.lane.b32.xlu0 %v24_v7, %s89_s17 }
  0xec   :  { %v51_v8 = vpop.permute.xlu1 %50 }
  0xed   :  { %v52_v9 = vsel %vm18_vm0, %v51_v8, %v83_v1 }
  0xee   :  { %54 = vrot.lane.b32.xlu1 %v52_v9, %s89_s17 }
 0x15c   :  { %v27_v15 = vpop.permute.xlu0 %26 }
 0x15d   :  { %v29_v16 = vsel %vm15_vm1, 0.0, %v27_v15 }
 0x15e   :  { %v31_v17 = vmax.f32 %v30_v13, %v29_v16 }
 0x160   :  { %33 = vst.msk [vmem:[%s142_s2] sm:$0xf] %vm32_vm2, %v31_v17  ;;  %v55_v19 = vpop.permute.xlu1 %54  ;;  %v34_v20 = vsel %vm32_vm2, %v31_v17, 0.0  ;;  %v38_v21 = vmul.f32 %v31_v17, %v31_v17 }
 0x161   :  { %v57_v22 = vsel %vm15_vm1, 0.0, %v55_v19  ;;  %35 = vadd.xlane.f32.xlu0 %v34_v20 }
 0x162   :  { %v59_v23 = vmax.f32 %v58_v18, %v57_v22  ;;  %v39_v25 = vsel %vm32_vm2, %v38_v21, 0.0 }
 0x164   :  { %85 = vst.msk [vmem:[%s142_s2 + $0x4] sm:$0xf] %vm32_vm2, %v59_v23  ;;  %v62_v24 = vsel %vm32_vm2, %v59_v23, 0.0  ;;  %v66_v26 = vmul.f32 %v59_v23, %v59_v23 }
 0x165   :  { %63 = vadd.xlane.f32.xlu1 %v62_v24  ;;  %40 = vadd.xlane.f32.xlu0 %v39_v25 }
 0x166   :  { %v67_v27 = vsel %vm32_vm2, %v66_v26, 0.0 }
 0x169   :  { %68 = vadd.xlane.f32.xlu0 %v67_v27 }
 0x1ea   :  { %v36_v28 = vpop.xlane.xlu0 %35 }
 0x1ee   :  { %v64_v29 = vpop.xlane.xlu1 %63  ;;  %v41_v30 = vpop.xlane.xlu0 %40 }
 0x1ef   :  { %v65_v31 = vadd.f32 %v64_v29, %v36_v28 }
 0x1f1   :  { %72 = vst.msk [vmem:[%s143_s3] sm:$0xf] %vm71_vm3, %v65_v31 }
 0x1f2   :  { %v69_v32 = vpop.xlane.xlu0 %68 }
 0x1f3   :  { %v70_v33 = vadd.f32 %v69_v32, %v41_v30 }
 0x1f5   :  { %74 = vst.msk [vmem:[%s143_s3] sm:$0xf] %vm73_vm4, %v70_v33 }

// kernel: resnet_block.5
= control target key start
LH: loop header
LB: loop body
LE: loop exit
PB: predicated region body
PF: predicated region fallthrough
CT: control target
= control target key end

     0   :  { %v671_v1 = vmov 0   ;;  %s787_s0 = inlined_call_operand.vmem [shape: f32[2,4,8], index: 0, kind: input, shape index: {}]   ;;  %s788_s1 = inlined_call_operand.vmem [shape: f32[2,4,8], index: 1, kind: input, shape index: {}]   ;;  %s789_s2 = inlined_call_operand.vmem [shape: f32[3,4,4], index: 2, kind: input, shape index: {}]   ;;  %s790_s3 = inlined_call_operand.vmem [shape: f32[3,4,1], index: 3, kind: input, shape index: {}]   ;;  %s791_s4 = inlined_call_operand.hbm [shape: f32[2,4,8], index: 4, kind: output, shape index: {}]  }
   0x1   :  { %v577_v0 = vld [vmem:[%s790_s3 + $0x4] sm:$0xf]  ;;  %648 = vset.pattern.permute.xlu0 %v671_v1 }
   0x2   :  { %9 = vsyncpa [#allocation3], 0  ;;  %30 = vperm.xlu0 %648, %v577_v0   ;;  %v578_v2 = vld [vmem:[%s790_s3 + $0x8] sm:$0xf]  ;;  %v672_v3 = vmov 0.0   ;;  %vm673_vm0 = vmmov 0   ;;  %v18_v26 = vlaneseq }
   0x3   :  { %609 = vmatprep.subr.mxu0 %v672_v3  ;;  %614 = vmatprep.subr.mxu1 %v672_v3  ;;  %v27_v4 = vld [vmem:[%s787_s0] sm:$0xf]  ;;  %v587_v6 = vld [vmem:[%s787_s0 + $0x4] sm:$0xf]  ;;  %vm68_vm1 = vcmask 1043456   ;;  %vm64_vm2 = vcmask 31744  }
   0x4   :  { %611 = vmatprep.mubr.msk.f32.mxu0 %vm673_vm0, %v672_v3  ;;  %616 = vmatprep.mubr.msk.f32.mxu1 %vm673_vm0, %v672_v3  ;;  %v579_v13 = vld [vmem:[%s789_s2 + $0x4] sm:$0xf]  ;;  %s674_s0 = smov 8   ;;  %vm41_vm3 = vcmask 1047616   ;;  %s675_s25 = smov 121   ;;  %v19_v27 = vand.u32 127, %v18_v26 }
   0x5   :  { %s676_s26 = smov 127   ;;  %v22_v25 = vld [vmem:[%s790_s3] sm:$0xf]  ;;  %v584_v33 = vld [vmem:[%s789_s2 + $0x8] sm:$0xf]  ;;  %vm301_vm6 = vcmask 60416  }
   0x6   :  { %36 = vperm.xlu0 %648, %v578_v2   ;;  %vm20_vm4 = vcmp.eq.s32.totalorder %v19_v27, 0  ;;  %vm21_vm5 = vcmp.eq.s32.totalorder %v19_v27, 7  ;;  %v142_v30 = vld [vmem:[%s789_s2] sm:$0xf]  ;;  %v588_v36 = vld [vmem:[%s789_s2 + $0x4] sm:$0xf] }
   0x7   :  { %v400_v39 = vld [vmem:[%s789_s2] sm:$0xf]  ;;  %v593_v40 = vld [vmem:[%s789_s2 + $0x8] sm:$0xf]  ;;  %v596_v58 = vld [vmem:[%s788_s1 + $0x4] sm:$0xf] }
   0x8   :  { %v299_v46 = vld [vmem:[%s788_s1] sm:$0xf]  ;;  %s677_s15 = smov [#allocation2]  }
   0x9   :  { %s566_s16 = sshll.u32 %s677_s15, 4  ;;  %s567_s16 = int_to_ptr.vmem [resolvable:$true] %s566_s16 }
   0xa   :  { %s649_s17 = scalar_lea.vmem %s567_s16, 128  ;;  %p654_p1 = scmp.lt.s32.totalorder %s567_s16, %s567_s16 }
   0xb   :  { %p650_p0 = scmp.ne.s32.totalorder %s567_s16, %s649_s17  ;;  %p655_p2 = scmp.lt.s32.totalorder %s649_s17, %s649_s17 }
   0xd   :  { %p656_p3 = por %p655_p2, %p654_p1 }
   0xf   :  { %p657_p4 = pnand %p656_p3, %p650_p0 }
  0x7d   :  { %v31_v5 = vpop.permute.xlu0 %30 }
  0x7e   :  { %v33_v7 = vmul.f32 %v31_v5, %v27_v4  ;;  %v305_v9 = vmul.f32 %v587_v6, %v31_v5 }
  0x81   :  { %v37_v8 = vpop.permute.xlu0 %36 }
  0x82   :  { %v39_v10 = vadd.f32 %v37_v8, %v33_v7  ;;  %v306_v12 = vadd.f32 %v305_v9, %v37_v8 }
  0x84   :  { %v40_v11 = vmax.f32 %v39_v10, 0.0  ;;  %v307_v14 = vmax.f32 %v306_v12, 0.0 }
  0x86   :  { %42 = vrot.lane.b32.xlu1 %v40_v11, %s674_s0  ;;  %610 = vmatpush3.msk.msra.mxu0 %vm68_vm1, %v40_v11 }
  0x87   :  { %612 = vmatmul.mubr.msk.f32.vlgmr.msra.gmra.mxu0 %vm64_vm2, %v579_v13  ;;  %619 = vmatprep.subr.mxu0 %v672_v3 }
  0x88   :  { %621 = vmatprep.mubr.msk.f32.mxu0 %vm673_vm0, %v672_v3 }
  0x8a   :  { %308 = vrot.lane.b32.xlu1 %v307_v14, %s674_s0 }
  0xf8   :  { %v43_v15 = vpop.permute.xlu1 %42 }
  0xf9   :  { %v44_v16 = vsel %vm41_vm3, %v43_v15, %v40_v11 }
  0xfa   :  { %45 = vrot.lane.b32.xlu0 %v44_v16, %s674_s0 }
  0xfc   :  { %v309_v17 = vpop.permute.xlu1 %308 }
  0xfd   :  { %v310_v18 = vsel %vm41_vm3, %v309_v17, %v307_v14 }
  0xfe   :  { %311 = vrot.lane.b32.xlu1 %v310_v18, %s674_s0 }
 0x147   :  { %v138_v19 = vpop.f32.mrf.mxu0 }
 0x149   :  { %v613_v22 = vpop.f32.mrf.mxu0 }
 0x16c   :  { %v46_v20 = vpop.permute.xlu0 %45 }
 0x16d   :  { %v47_v21 = vsel %vm41_vm3, %v46_v20, %v40_v11 }
 0x16e   :  { %49 = vrot.lane.b32.xlu0 %v47_v21, %s675_s25  ;;  %53 = vrot.lane.b32.xlu1 %v47_v21, %s676_s26 }
 0x170   :  { %v312_v23 = vpop.permute.xlu1 %311 }
 0x171   :  { %v313_v24 = vsel %vm41_vm3, %v312_v23, %v307_v14 }
 0x172   :  { %319 = vrot.lane.b32.xlu1 %v313_v24, %s676_s26  ;;  %315 = vrot.lane.b32.xlu0 %v313_v24, %s675_s25 }
 0x176   :  { %61 = vperm.xlu0 %648, %v22_v25  }
 0x1e0   :  { %v50_v28 = vpop.permute.xlu0 %49  ;;  %v54_v29 = vpop.permute.xlu1 %53 }
 0x1e1   :  { %v52_v31 = vsel %vm20_vm4, 0.0, %v50_v28  ;;  %v56_v32 = vsel %vm21_vm5, 0.0, %v54_v29 }
 0x1e2   :  { %615 = vmatpush3.msk.msra.mxu1 %vm68_vm1, %v52_v31  ;;  %620 = vmatpush3.msk.msra.mxu0 %vm68_vm1, %v56_v32 }
 0x1e3   :  { %617 = vmatmul.mubr.msk.f32.vlgmr.msra.gmra.mxu1 %vm64_vm2, %v142_v30  ;;  %624 = vmatprep.subr.mxu1 %v672_v3 }
 0x1e4   :  { %v316_v34 = vpop.permute.xlu0 %315  ;;  %v320_v35 = vpop.permute.xlu1 %319  ;;  %622 = vmatmul.mubr.msk.f32.vlgmr.msra.gmra.mxu0 %vm64_vm2, %v584_v33  ;;  %625 = vmatpush3.msk.msra.mxu1 %vm68_vm1, %v307_v14 }
 0x1e5   :  { %v318_v37 = vsel %vm20_vm4, 0.0, %v316_v34  ;;  %v322_v38 = vsel %vm21_vm5, 0.0, %v320_v35  ;;  %629 = vmatprep.subr.mxu0 %v672_v3  ;;  %626 = vmatprep.mubr.msk.f32.mxu1 %vm673_vm0, %v672_v3 }
 0x1e6   :  { %630 = vmatpush3.msk.msra.mxu0 %vm68_vm1, %v318_v37  ;;  %634 = vmatprep.subr.mxu1 %v672_v3 }
 0x1e7   :  { %627 = vmatmul.mubr.msk.f32.vlgmr.msra.gmra.mxu1 %vm64_vm2, %v588_v36  ;;  %631 = vmatprep.mubr.msk.f32.mxu0 %vm673_vm0, %v672_v3 }
 0x1e8   :  { %635 = vmatpush3.msk.msra.mxu1 %vm68_vm1, %v322_v38  ;;  %632 = vmatmul.mubr.msk.f32.vlgmr.msra.gmra.mxu0 %vm64_vm2, %v400_v39 }
 0x1e9   :  { %636 = vmatprep.mubr.msk.f32.mxu1 %vm673_vm0, %v672_v3 }
 0x1eb   :  { %637 = vmatmul.mubr.msk.f32.vlgmr.msra.gmra.mxu1 %vm64_vm2, %v593_v40 }
 0x1f1   :  { %v62_v41 = vpop.permute.xlu0 %61 }
 0x1f2   :  { %v139_v42 = vadd.f32 %v138_v19, %v62_v41 }
 0x2a3   :  { %v215_v43 = vpop.f32.mrf.mxu1 }
 0x2a4   :  { %v219_v44 = vadd.f32 %v215_v43, %v139_v42  ;;  %v294_v45 = vpop.f32.mrf.mxu0 }
 0x2a5   :  { %v618_v47 = vpop.f32.mrf.mxu1 }
 0x2a6   :  { %v298_v48 = vadd.f32 %v294_v45, %v219_v44  ;;  %v623_v49 = vpop.f32.mrf.mxu0 }
 0x2a7   :  { %v396_v50 = vpop.f32.mrf.mxu1 }
 0x2a8   :  { %v300_v51 = vadd.f32 %v299_v46, %v298_v48  ;;  %v397_v52 = vadd.f32 %v396_v50, %v62_v41  ;;  %v473_v53 = vpop.f32.mrf.mxu0 }
 0x2a9   :  { %v628_v54 = vpop.f32.mrf.mxu1 }
 0x2aa   :  { %302 = vst.msk [vmem:[#allocation2] sm:$0xf] %vm301_vm6, %v300_v51  ;;  %v477_v55 = vadd.f32 %v473_v53, %v397_v52  ;;  %v633_v56 = vpop.f32.mrf.mxu0 }
 0x2ab   :  { %v551_v57 = vpop.f32.mrf.mxu1 }
 0x2ac   :  { %v555_v59 = vadd.f32 %v551_v57, %v477_v55 }
 0x2ad   :  { %v638_v60 = vpop.f32.mrf.mxu1 }
 0x2ae   :  { %v558_v61 = vadd.f32 %v596_v58, %v555_v59 }
 0x2b0   :  { %560 = vst.msk [vmem:[#allocation2 + $0x4] sm:$0xf] %vm301_vm6, %v558_v61 }
 0x2b1   :  { %660 = shalt.err (!%p657_p4)
}
 0x2b2   :  { %s678_s18 = smov 64   ;;  %s679_s19 = smov 4  }
 0x2b3   :  { %572 = dma.vmem_to_hbm [thread:$0]  %s567_s16, 128, %s791_s4, [#allocation3], %s678_s18, %s678_s18, %s679_s19  }
 0x2b4   :  { %669 = dma.done.wait [#allocation3], 128  }
 0x2b5   :  { %670 = vsyncadd [#allocation3], 4294967168 }
 0x2b6   :  { %576 = vsyncpa [#allocation3], 1 }

// kernel: resnet_block.4
= control target key start
LH: loop header
LB: loop body
LE: loop exit
PB: predicated region body
PF: predicated region fallthrough
CT: control target
= control target key end

     0   :  { %v653_v0 = vmov 0   ;;  %v654_v3 = vmov 0.0   ;;  %vm655_vm0 = vmmov 0   ;;  %vm66_vm1 = vcmask 1043456   ;;  %s657_s25 = smov 121   ;;  %s658_s26 = smov 127   ;;  %s769_s2 = inlined_call_operand.vmem [shape: f32[3,4,1], index: 2, kind: input, shape index: {}]   ;;  %s770_s0 = inlined_call_operand.vmem [shape: f32[2,4,8], index: 0, kind: input, shape index: {}]   ;;  %s771_s1 = inlined_call_operand.vmem [shape: f32[3,4,4], index: 1, kind: input, shape index: {}]   ;;  %s772_s3 = inlined_call_operand.vmem [shape: f32[2,4,8], index: 3, kind: output, shape index: {0}]   ;;  %s773_s4 = inlined_call_operand.vmem [shape: f32[1,4,2], index: 4, kind: output, shape index: {1}]  }
   0x1   :  { %652 = vset.pattern.permute.xlu0 %v653_v0  ;;  %v584_v1 = vld [vmem:[%s769_s2 + $0x4] sm:$0xf]  ;;  %v585_v2 = vld [vmem:[%s769_s2 + $0x8] sm:$0xf]  ;;  %616 = vmatprep.subr.mxu0 %v654_v3  ;;  %v25_v5 = vld [vmem:[%s770_s0] sm:$0xf]  ;;  %v16_v26 = vlaneseq }
   0x2   :  { %28 = vperm.xlu0 %652, %v584_v1   ;;  %621 = vmatprep.subr.mxu1 %v654_v3  ;;  %v594_v6 = vld [vmem:[%s770_s0 + $0x4] sm:$0xf]  ;;  %vm62_vm2 = vcmask 31744   ;;  %s656_s0 = smov 8   ;;  %vm39_vm3 = vcmask 1047616   ;;  %vm297_vm6 = vcmask 60416  }
   0x3   :  { %618 = vmatprep.mubr.msk.f32.mxu0 %vm655_vm0, %v654_v3  ;;  %623 = vmatprep.mubr.msk.f32.mxu1 %vm655_vm0, %v654_v3  ;;  %v586_v13 = vld [vmem:[%s771_s1 + $0x4] sm:$0xf]  ;;  %v20_v24 = vld [vmem:[%s769_s2] sm:$0xf]  ;;  %v17_v27 = vand.u32 127, %v16_v26  ;;  %vm572_vm7 = vcmask 3072  }
   0x4   :  { %v140_v30 = vld [vmem:[%s771_s1] sm:$0xf]  ;;  %v591_v33 = vld [vmem:[%s771_s1 + $0x8] sm:$0xf]  ;;  %v595_v36 = vld [vmem:[%s771_s1 + $0x4] sm:$0xf] }
   0x5   :  { %vm18_vm4 = vcmp.eq.s32.totalorder %v17_v27, 0  ;;  %vm19_vm5 = vcmp.eq.s32.totalorder %v17_v27, 7  ;;  %v405_v39 = vld [vmem:[%s771_s1] sm:$0xf]  ;;  %v600_v40 = vld [vmem:[%s771_s1 + $0x8] sm:$0xf] }
   0x6   :  { %34 = vperm.xlu0 %652, %v585_v2   ;;  %vm574_vm8 = vcmask 11272  }
  0x7d   :  { %v29_v4 = vpop.permute.xlu0 %28 }
  0x7e   :  { %v31_v7 = vmul.f32 %v29_v4, %v25_v5  ;;  %v310_v9 = vmul.f32 %v594_v6, %v29_v4 }
  0x81   :  { %v35_v8 = vpop.permute.xlu0 %34 }
  0x82   :  { %v37_v10 = vadd.f32 %v35_v8, %v31_v7  ;;  %v311_v12 = vadd.f32 %v310_v9, %v35_v8 }
  0x84   :  { %v38_v11 = vmax.f32 %v37_v10, 0.0  ;;  %v312_v14 = vmax.f32 %v311_v12, 0.0 }
  0x86   :  { %40 = vrot.lane.b32.xlu1 %v38_v11, %s656_s0  ;;  %617 = vmatpush3.msk.msra.mxu0 %vm66_vm1, %v38_v11 }
  0x87   :  { %619 = vmatmul.mubr.msk.f32.vlgmr.msra.gmra.mxu0 %vm62_vm2, %v586_v13  ;;  %626 = vmatprep.subr.mxu0 %v654_v3 }
  0x88   :  { %628 = vmatprep.mubr.msk.f32.mxu0 %vm655_vm0, %v654_v3 }
  0x8a   :  { %313 = vrot.lane.b32.xlu1 %v312_v14, %s656_s0 }
  0xf8   :  { %v41_v15 = vpop.permute.xlu1 %40 }
  0xf9   :  { %v42_v16 = vsel %vm39_vm3, %v41_v15, %v38_v11 }
  0xfa   :  { %43 = vrot.lane.b32.xlu0 %v42_v16, %s656_s0 }
  0xfc   :  { %v314_v17 = vpop.permute.xlu1 %313 }
  0xfd   :  { %v315_v18 = vsel %vm39_vm3, %v314_v17, %v312_v14 }
  0xfe   :  { %316 = vrot.lane.b32.xlu1 %v315_v18, %s656_s0 }
 0x147   :  { %v136_v23 = vpop.f32.mrf.mxu0 }
 0x149   :  { %v620_v25 = vpop.f32.mrf.mxu0 }
 0x16c   :  { %v44_v19 = vpop.permute.xlu0 %43 }
 0x16d   :  { %v45_v20 = vsel %vm39_vm3, %v44_v19, %v38_v11 }
 0x16e   :  { %47 = vrot.lane.b32.xlu0 %v45_v20, %s657_s25  ;;  %51 = vrot.lane.b32.xlu1 %v45_v20, %s658_s26 }
 0x170   :  { %v317_v21 = vpop.permute.xlu1 %316 }
 0x171   :  { %v318_v22 = vsel %vm39_vm3, %v317_v21, %v312_v14 }
 0x172   :  { %324 = vrot.lane.b32.xlu1 %v318_v22, %s658_s26  ;;  %320 = vrot.lane.b32.xlu0 %v318_v22, %s657_s25 }
 0x176   :  { %59 = vperm.xlu0 %652, %v20_v24  }
 0x1e0   :  { %v48_v28 = vpop.permute.xlu0 %47  ;;  %v52_v29 = vpop.permute.xlu1 %51 }
 0x1e1   :  { %v50_v31 = vsel %vm18_vm4, 0.0, %v48_v28  ;;  %v54_v32 = vsel %vm19_vm5, 0.0, %v52_v29 }
 0x1e2   :  { %622 = vmatpush3.msk.msra.mxu1 %vm66_vm1, %v50_v31  ;;  %627 = vmatpush3.msk.msra.mxu0 %vm66_vm1, %v54_v32 }
 0x1e3   :  { %624 = vmatmul.mubr.msk.f32.vlgmr.msra.gmra.mxu1 %vm62_vm2, %v140_v30  ;;  %631 = vmatprep.subr.mxu1 %v654_v3 }
 0x1e4   :  { %632 = vmatpush3.msk.msra.mxu1 %vm66_vm1, %v312_v14  ;;  %v321_v34 = vpop.permute.xlu0 %320  ;;  %v325_v35 = vpop.permute.xlu1 %324  ;;  %629 = vmatmul.mubr.msk.f32.vlgmr.msra.gmra.mxu0 %vm62_vm2, %v591_v33 }
 0x1e5   :  { %v323_v37 = vsel %vm18_vm4, 0.0, %v321_v34  ;;  %v327_v38 = vsel %vm19_vm5, 0.0, %v325_v35  ;;  %636 = vmatprep.subr.mxu0 %v654_v3  ;;  %633 = vmatprep.mubr.msk.f32.mxu1 %vm655_vm0, %v654_v3 }
 0x1e6   :  { %637 = vmatpush3.msk.msra.mxu0 %vm66_vm1, %v323_v37  ;;  %641 = vmatprep.subr.mxu1 %v654_v3 }
 0x1e7   :  { %634 = vmatmul.mubr.msk.f32.vlgmr.msra.gmra.mxu1 %vm62_vm2, %v595_v36  ;;  %638 = vmatprep.mubr.msk.f32.mxu0 %vm655_vm0, %v654_v3 }
 0x1e8   :  { %642 = vmatpush3.msk.msra.mxu1 %vm66_vm1, %v327_v38  ;;  %639 = vmatmul.mubr.msk.f32.vlgmr.msra.gmra.mxu0 %vm62_vm2, %v405_v39 }
 0x1e9   :  { %643 = vmatprep.mubr.msk.f32.mxu1 %vm655_vm0, %v654_v3 }
 0x1eb   :  { %644 = vmatmul.mubr.msk.f32.vlgmr.msra.gmra.mxu1 %vm62_vm2, %v600_v40 }
 0x1f1   :  { %v60_v41 = vpop.permute.xlu0 %59 }
 0x1f2   :  { %v137_v42 = vadd.f32 %v136_v23, %v60_v41 }
 0x2a3   :  { %v213_v43 = vpop.f32.mrf.mxu1 }
 0x2a4   :  { %v217_v44 = vadd.f32 %v213_v43, %v137_v42  ;;  %v292_v45 = vpop.f32.mrf.mxu0 }
 0x2a5   :  { %v625_v46 = vpop.f32.mrf.mxu1 }
 0x2a6   :  { %v296_v47 = vadd.f32 %v292_v45, %v217_v44  ;;  %v630_v48 = vpop.f32.mrf.mxu0 }
 0x2a7   :  { %v401_v49 = vpop.f32.mrf.mxu1 }
 0x2a8   :  { %298 = vst.msk [vmem:[%s772_s3] sm:$0xf] %vm297_vm6, %v296_v47  ;;  %v402_v50 = vadd.f32 %v401_v49, %v60_v41  ;;  %v478_v51 = vpop.f32.mrf.mxu0  ;;  %v299_v52 = vsel %vm297_vm6, %v296_v47, 0.0  ;;  %v303_v61 = vmul.f32 %v296_v47, %v296_v47 }
 0x2a9   :  { %v635_v53 = vpop.f32.mrf.mxu1  ;;  %300 = vadd.xlane.f32.xlu1 %v299_v52 }
 0x2aa   :  { %v482_v54 = vadd.f32 %v478_v51, %v402_v50  ;;  %v640_v55 = vpop.f32.mrf.mxu0  ;;  %v304_v63 = vsel %vm297_vm6, %v303_v61, 0.0 }
 0x2ab   :  { %v556_v56 = vpop.f32.mrf.mxu1 }
 0x2ac   :  { %v560_v57 = vadd.f32 %v556_v56, %v482_v54 }
 0x2ad   :  { %v645_v58 = vpop.f32.mrf.mxu1 }
 0x2ae   :  { %603 = vst.msk [vmem:[%s772_s3 + $0x4] sm:$0xf] %vm297_vm6, %v560_v57  ;;  %v563_v59 = vsel %vm297_vm6, %v560_v57, 0.0  ;;  %v567_v60 = vmul.f32 %v560_v57, %v560_v57 }
 0x2af   :  { %564 = vadd.xlane.f32.xlu0 %v563_v59 }
 0x2b0   :  { %v568_v62 = vsel %vm297_vm6, %v567_v60, 0.0 }
 0x2b1   :  { %569 = vadd.xlane.f32.xlu1 %v568_v62 }
 0x2b3   :  { %305 = vadd.xlane.f32.xlu0 %v304_v63 }
 0x332   :  { %v301_v0 = vpop.xlane.xlu1 %300 }
 0x338   :  { %v565_v1 = vpop.xlane.xlu0 %564 }
 0x339   :  { %v566_v2 = vadd.f32 %v565_v1, %v301_v0 }
 0x33a   :  { %v570_v3 = vpop.xlane.xlu1 %569 }
 0x33b   :  { %573 = vst.msk [vmem:[%s773_s4] sm:$0xf] %vm572_vm7, %v566_v2 }
 0x33c   :  { %v306_v4 = vpop.xlane.xlu0 %305 }
 0x33d   :  { %v571_v5 = vadd.f32 %v570_v3, %v306_v4 }
 0x33f   :  { %575 = vst.msk [vmem:[%s773_s4] sm:$0xf] %vm574_vm8, %v571_v5 }

</bundles_post_ra>
